<compile_context>
chip_gen: v7x
topology: tpu7x:2x2x1
jax: 0.10.0
libtpu: 0.0.40
codegen_flags: <defaults>
</compile_context>

<pallas_src>
import functools

import jax
import jax.numpy as jnp
from jax.experimental import pallas as pl
from jax.experimental.pallas import tpu as pltpu

_LANE = 128       # lane width: pad feature dims to this (dense stores, full MXU tiles)
_SUBLANE = 8      # sublane width: batch tile must be a multiple of this
_NEG_INF = -1e30  # bias for padded output logits (masked out of log_softmax)


def _round_up(n, m):
    return ((n + m - 1) // m) * m


def _pad_axis(a, axis, multiple, value=0.0):
    pad = (-a.shape[axis]) % multiple
    if pad == 0:
        return a
    widths = [(0, 0)] * a.ndim
    widths[axis] = (0, pad)
    return jnp.pad(a, widths, constant_values=value)


def _make_mlp_kernel(num_linear):
    """Fused MLP: [Linear -> ReLU]*(n-1) -> Linear -> log_softmax(axis=1)."""

    def kernel(x_ref, *refs):
        o_ref = refs[-1]
        param_refs = refs[:-1]            # (w0, b0, w1, b1, ..., w_last, b_last)

        h = x_ref[...]                    # f32 batch tile
        for li in range(num_linear):
            w_ref = param_refs[2 * li]    # bf16 (in, out)
            b_ref = param_refs[2 * li + 1]  # f32 (1, out)
            # bf16 operands on the MXU, f32 accumulation; bias/ReLU in f32.
            h = jnp.dot(h.astype(jnp.bfloat16), w_ref[...],
                        preferred_element_type=jnp.float32) + b_ref[...]
            if li < num_linear - 1:
                h = jnp.maximum(h, 0.0)

        logits = h
        # Numerically stable log_softmax along the feature axis. Padded logit
        # columns were biased to -1e30, so they never win the max and exp -> 0.
        m = jnp.max(logits, axis=1, keepdims=True)
        shifted = logits - m
        lse = jnp.log(jnp.sum(jnp.exp(shifted), axis=1, keepdims=True))
        o_ref[...] = (shifted - lse).astype(o_ref.dtype)

    return kernel


@functools.partial(jax.jit, static_argnames=("tb_max",))
def net_forward(x, params, *, tb_max=512):
    """params = ((W0, b0), ..., (Wn, bn)); W_i is (in, out) f32, b_i is (1, out) f32."""
    num_linear = len(params)
    batch, in_features = x.shape
    out_size = params[-1][0].shape[1]

    # --- Lane-pad feature dims to multiples of 128. Hidden pads are zeros
    # (ReLU(0) = 0, contributes nothing downstream); the output-layer bias pad
    # is -1e30 so padded logits are masked out of the softmax normalization.
    flat_params = []
    for li, (w, b) in enumerate(params):
        is_last = li == num_linear - 1
        wp = w if li == 0 else _pad_axis(w, 0, _LANE)   # rows follow prev layer's cols
        wp = _pad_axis(wp, 1, _LANE)                    # pad output features
        bp = _pad_axis(b, 1, _LANE, value=_NEG_INF if is_last else 0.0)
        flat_params += [wp.astype(jnp.bfloat16), bp.astype(jnp.float32)]
    out_p = flat_params[-2].shape[1]

    # --- Batch tiling: as large as practical (double-buffered by BlockSpec),
    # multiple of 8 sublanes; batch padded to a whole number of tiles.
    tb = min(tb_max, _round_up(batch, _SUBLANE))
    batch_p = _round_up(batch, tb)
    x_p = _pad_axis(x, 0, tb)
    grid = (batch_p // tb,)

    x_spec = pl.BlockSpec((tb, in_features), lambda i: (i, 0))
    out_spec = pl.BlockSpec((tb, out_p), lambda i: (i, 0))
    # Weights/biases: full-array blocks, constant index map -> fetched once,
    # stay VMEM-resident across all batch tiles.
    param_specs = [pl.BlockSpec(p.shape, lambda i: (0, 0)) for p in flat_params]

    # Advisory cost estimate so XLA schedules around the custom call sensibly.
    flops = 0
    for li in range(num_linear):
        wshape = flat_params[2 * li].shape
        flops += 2 * batch_p * wshape[0] * wshape[1]
    bytes_accessed = int(
        x_p.size * 4
        + sum(int(p.size) * p.dtype.itemsize for p in flat_params)
        + batch_p * out_p * 4
    )
    cost = pl.CostEstimate(flops=flops,
                           transcendentals=batch_p * out_p,
                           bytes_accessed=bytes_accessed)

    out = pl.pallas_call(
        _make_mlp_kernel(num_linear),
        out_shape=jax.ShapeDtypeStruct((batch_p, out_p), jnp.float32),
        grid=grid,
        in_specs=[x_spec] + param_specs,
        out_specs=out_spec,
        compiler_params=pltpu.CompilerParams(
            # Batch tiles are independent -> shard across v7x's 2 TensorCores;
            # harmless on single-TC v5e/v6e.
            dimension_semantics=("parallel",),
        ),
        cost_estimate=cost,
    )(x_p, *flat_params)

    # Drop batch padding and the lane-padded logit columns.
    return out[:batch, :out_size]


def init_params(key, input_size, num_layers, layers_size, output_size):
    """Init mirroring the nn.Linear shapes of the PyTorch Net.

    Weights are generated directly in (in, out) layout; biases as (1, out).
    """
    dims = [input_size] + list(layers_size) + [output_size]
    assert len(layers_size) == num_layers
    params = []
    for i in range(len(dims) - 1):
        fan_in, fan_out = dims[i], dims[i + 1]
        key, kw, kb = jax.random.split(key, 3)
        bound = 1.0 / float(fan_in) ** 0.5
        w = jax.random.uniform(kw, (fan_in, fan_out), jnp.float32, -bound, bound)
        b = jax.random.uniform(kb, (1, fan_out), jnp.float32, -bound, bound)
        params.append((w, b))
    return tuple(params)


def reference_forward(x, params):
    """Plain-JAX reference matching the kernel's bf16-matmul / f32-accumulate path."""
    def mm(a, w):
        return jnp.dot(a.astype(jnp.bfloat16), w.astype(jnp.bfloat16),
                       preferred_element_type=jnp.float32)

    h = x
    for li, (w, b) in enumerate(params):
        h = mm(h, w) + b
        if li < len(params) - 1:
            h = jnp.maximum(h, 0.0)
    return jax.nn.log_softmax(h, axis=1)


if __name__ == "__main__":
    # Small shapes consistent with the module: 2 hidden layers.
    batch = 8
    input_size = 32
    num_layers = 2
    layers_size = [64, 32]
    output_size = 16

    key = jax.random.PRNGKey(0)
    key, kx = jax.random.split(key)
    x = jax.random.normal(kx, (batch, input_size), jnp.float32)
    params = init_params(key, input_size, num_layers, layers_size, output_size)

    out = jax.block_until_ready(net_forward(x, params))
    ref = reference_forward(x, params)

    assert out.shape == (batch, output_size)
    assert jnp.allclose(out, ref, atol=1e-4, rtol=1e-4), "mismatch vs reference"

    print("KERNEL_OK")
</pallas_src>

<mosaic_0001>
module attributes {stable_mosaic.version = 11 : i64} {
  func.func @kernel(%arg0: i32, %arg1: memref<8x32xf32, #tpu.memory_space<vmem>>, %arg2: memref<32x128xbf16, #tpu.memory_space<vmem>>, %arg3: memref<1x128xf32, #tpu.memory_space<vmem>>, %arg4: memref<128x128xbf16, #tpu.memory_space<vmem>>, %arg5: memref<1x128xf32, #tpu.memory_space<vmem>>, %arg6: memref<128x128xbf16, #tpu.memory_space<vmem>>, %arg7: memref<1x128xf32, #tpu.memory_space<vmem>>, %arg8: memref<8x128xf32, #tpu.memory_space<vmem>>) attributes {dimension_semantics = [#tpu.dimension_semantics<parallel>], iteration_bounds = array<i64: 1>, scalar_prefetch = 0 : i64, scratch_operands = 0 : i64, tpu.core_type = #tpu.core_type<tc>, window_params = [{transform_indices = @transform_0, window_bounds = array<i64: 8, 32>}, {pipeline_mode = #tpu.pipeline_mode<synchronous>, transform_indices = @transform_1, window_bounds = array<i64: 32, 128>}, {pipeline_mode = #tpu.pipeline_mode<synchronous>, transform_indices = @transform_2, window_bounds = array<i64: 1, 128>}, {pipeline_mode = #tpu.pipeline_mode<synchronous>, transform_indices = @transform_3, window_bounds = array<i64: 128, 128>}, {pipeline_mode = #tpu.pipeline_mode<synchronous>, transform_indices = @transform_4, window_bounds = array<i64: 1, 128>}, {pipeline_mode = #tpu.pipeline_mode<synchronous>, transform_indices = @transform_5, window_bounds = array<i64: 128, 128>}, {pipeline_mode = #tpu.pipeline_mode<synchronous>, transform_indices = @transform_6, window_bounds = array<i64: 1, 128>}, {transform_indices = @transform_7, window_bounds = array<i64: 8, 128>}]} {
    %c0 = arith.constant 0 : index
    %c0_0 = arith.constant 0 : index
    %0 = vector.load %arg1[%c0, %c0_0] : memref<8x32xf32, #tpu.memory_space<vmem>>, vector<8x32xf32>
    %1 = arith.truncf %0 : vector<8x32xf32> to vector<8x32xbf16>
    %c0_1 = arith.constant 0 : index
    %c0_2 = arith.constant 0 : index
    %2 = vector.load %arg2[%c0_1, %c0_2] : memref<32x128xbf16, #tpu.memory_space<vmem>>, vector<32x128xbf16>
    %cst = arith.constant dense<0.000000e+00> : vector<8x128xf32>
    %3 = tpu.matmul %1, %2, %cst {dimension_numbers = #tpu.dot_dimension_numbers<[1], [0], [0], [1], [0, 0, 1, 1], [], []>} : vector<8x32xbf16>, vector<32x128xbf16>, vector<8x128xf32> -> vector<8x128xf32>
    %c0_3 = arith.constant 0 : index
    %c0_4 = arith.constant 0 : index
    %4 = vector.load %arg3[%c0_3, %c0_4] : memref<1x128xf32, #tpu.memory_space<vmem>>, vector<1x128xf32>
    %5 = vector.broadcast %4 : vector<1x128xf32> to vector<8x128xf32>
    %6 = arith.addf %3, %5 : vector<8x128xf32>
    %cst_5 = arith.constant 0.000000e+00 : f32
    %7 = vector.broadcast %cst_5 : f32 to vector<8x128xf32>
    %8 = arith.maximumf %6, %7 : vector<8x128xf32>
    %9 = arith.truncf %8 : vector<8x128xf32> to vector<8x128xbf16>
    %c0_6 = arith.constant 0 : index
    %c0_7 = arith.constant 0 : index
    %10 = vector.load %arg4[%c0_6, %c0_7] : memref<128x128xbf16, #tpu.memory_space<vmem>>, vector<128x128xbf16>
    %cst_8 = arith.constant dense<0.000000e+00> : vector<8x128xf32>
    %11 = tpu.matmul %9, %10, %cst_8 {dimension_numbers = #tpu.dot_dimension_numbers<[1], [0], [0], [1], [0, 0, 1, 1], [], []>} : vector<8x128xbf16>, vector<128x128xbf16>, vector<8x128xf32> -> vector<8x128xf32>
    %c0_9 = arith.constant 0 : index
    %c0_10 = arith.constant 0 : index
    %12 = vector.load %arg5[%c0_9, %c0_10] : memref<1x128xf32, #tpu.memory_space<vmem>>, vector<1x128xf32>
    %13 = vector.broadcast %12 : vector<1x128xf32> to vector<8x128xf32>
    %14 = arith.addf %11, %13 : vector<8x128xf32>
    %cst_11 = arith.constant 0.000000e+00 : f32
    %15 = vector.broadcast %cst_11 : f32 to vector<8x128xf32>
    %16 = arith.maximumf %14, %15 : vector<8x128xf32>
    %17 = arith.truncf %16 : vector<8x128xf32> to vector<8x128xbf16>
    %c0_12 = arith.constant 0 : index
    %c0_13 = arith.constant 0 : index
    %18 = vector.load %arg6[%c0_12, %c0_13] : memref<128x128xbf16, #tpu.memory_space<vmem>>, vector<128x128xbf16>
    %cst_14 = arith.constant dense<0.000000e+00> : vector<8x128xf32>
    %19 = tpu.matmul %17, %18, %cst_14 {dimension_numbers = #tpu.dot_dimension_numbers<[1], [0], [0], [1], [0, 0, 1, 1], [], []>} : vector<8x128xbf16>, vector<128x128xbf16>, vector<8x128xf32> -> vector<8x128xf32>
    %c0_15 = arith.constant 0 : index
    %c0_16 = arith.constant 0 : index
    %20 = vector.load %arg7[%c0_15, %c0_16] : memref<1x128xf32, #tpu.memory_space<vmem>>, vector<1x128xf32>
    %21 = vector.broadcast %20 : vector<1x128xf32> to vector<8x128xf32>
    %22 = arith.addf %19, %21 : vector<8x128xf32>
    %cst_17 = arith.constant dense<0xFF800000> : vector<8xf32>
    %23 = vector.multi_reduction <maximumf>, %22, %cst_17 [1] : vector<8x128xf32> to vector<8xf32>
    %24 = vector.shape_cast %23 : vector<8xf32> to vector<8x1xf32>
    %25 = vector.broadcast %24 : vector<8x1xf32> to vector<8x128xf32>
    %26 = arith.subf %22, %25 : vector<8x128xf32>
    %27 = math.exp %26 : vector<8x128xf32>
    %cst_18 = arith.constant dense<0.000000e+00> : vector<8xf32>
    %28 = vector.multi_reduction <add>, %27, %cst_18 [1] : vector<8x128xf32> to vector<8xf32>
    %29 = vector.shape_cast %28 : vector<8xf32> to vector<8x1xf32>
    %30 = math.log %29 : vector<8x1xf32>
    %31 = vector.broadcast %30 : vector<8x1xf32> to vector<8x128xf32>
    %32 = arith.subf %26, %31 : vector<8x128xf32>
    %c0_19 = arith.constant 0 : index
    %c0_20 = arith.constant 0 : index
    %33 = vector.load %arg8[%c0_19, %c0_20] : memref<8x128xf32, #tpu.memory_space<vmem>>, vector<8x128xf32>
    tpu.vector_store %arg8[%c0_19, %c0_20], %32 {strides = array<i32>} : memref<8x128xf32, #tpu.memory_space<vmem>>, vector<8x128xf32>,
    return
  }
  func.func @transform_0(%arg0: i32) -> (i32, i32) {
    %c0_i32 = arith.constant 0 : i32
    %c0_i32_0 = arith.constant 0 : i32
    return %arg0, %c0_i32 : i32, i32
  }
  func.func @transform_1(%arg0: i32) -> (i32, i32) {
    %c0_i32 = arith.constant 0 : i32
    %c0_i32_0 = arith.constant 0 : i32
    %c0_i32_1 = arith.constant 0 : i32
    return %c0_i32, %c0_i32_0 : i32, i32
  }
  func.func @transform_2(%arg0: i32) -> (i32, i32) {
    %c0_i32 = arith.constant 0 : i32
    %c0_i32_0 = arith.constant 0 : i32
    %c0_i32_1 = arith.constant 0 : i32
    return %c0_i32, %c0_i32_0 : i32, i32
  }
  func.func @transform_3(%arg0: i32) -> (i32, i32) {
    %c0_i32 = arith.constant 0 : i32
    %c0_i32_0 = arith.constant 0 : i32
    %c0_i32_1 = arith.constant 0 : i32
    return %c0_i32, %c0_i32_0 : i32, i32
  }
  func.func @transform_4(%arg0: i32) -> (i32, i32) {
    %c0_i32 = arith.constant 0 : i32
    %c0_i32_0 = arith.constant 0 : i32
    %c0_i32_1 = arith.constant 0 : i32
    return %c0_i32, %c0_i32_0 : i32, i32
  }
  func.func @transform_5(%arg0: i32) -> (i32, i32) {
    %c0_i32 = arith.constant 0 : i32
    %c0_i32_0 = arith.constant 0 : i32
    %c0_i32_1 = arith.constant 0 : i32
    return %c0_i32, %c0_i32_0 : i32, i32
  }
  func.func @transform_6(%arg0: i32) -> (i32, i32) {
    %c0_i32 = arith.constant 0 : i32
    %c0_i32_0 = arith.constant 0 : i32
    %c0_i32_1 = arith.constant 0 : i32
    return %c0_i32, %c0_i32_0 : i32, i32
  }
  func.func @transform_7(%arg0: i32) -> (i32, i32) {
    %c0_i32 = arith.constant 0 : i32
    %c0_i32_0 = arith.constant 0 : i32
    return %arg0, %c0_i32 : i32, i32
  }
}

</mosaic_0001>

<bundles_post_ra>
// kernel: net_forward.1
= control target key start
LH: loop header
LB: loop body
LE: loop exit
PB: predicated region body
PF: predicated region fallthrough
CT: control target
= control target key end

     0   :  { %v488_v1 = vmov 0.0   ;;  %vm489_vm0 = vmmov 0   ;;  %vm53_vm1 = vcmask 261120   ;;  %s633_s0 = inlined_call_operand.vmem [shape: f32[8,32], index: 0, kind: input, shape index: {}]   ;;  %s634_s1 = inlined_call_operand.vmem [shape: bf16[32,128], index: 1, kind: input, shape index: {}]   ;;  %s635_s2 = inlined_call_operand.vmem [shape: f32[1,128], index: 2, kind: input, shape index: {}]   ;;  %s636_s3 = inlined_call_operand.vmem [shape: bf16[128,128], index: 3, kind: input, shape index: {}]   ;;  %s637_s4 = inlined_call_operand.vmem [shape: f32[1,128], index: 4, kind: input, shape index: {}]   ;;  %s638_s5 = inlined_call_operand.vmem [shape: bf16[128,128], index: 5, kind: input, shape index: {}]   ;;  %s639_s6 = inlined_call_operand.vmem [shape: f32[1,128], index: 6, kind: input, shape index: {}]   ;;  %s640_s7 = inlined_call_operand.hbm [shape: f32[8,128], index: 7, kind: output, shape index: {}]  }
   0x1   :  { %v442_v0 = vld [vmem:[%s634_s1] sm:$0xff]   ;;  %391 = vmatprep.subr.bf16.mxu0 %v488_v1  ;;  %v443_v2 = vld [vmem:[%s634_s1 + $0x8] sm:$0xff]   ;;  %399 = vmatprep.subr.bf16.mxu1 %v488_v1  ;;  %v446_v7 = vld [vmem:[%s636_s3 + $0x10] sm:$0xff]  }
   0x2   :  { %392 = vmatpush3.bf16.msra.mxu0 %v442_v0  ;;  %395 = vmatprep.mubr.msk.bf16.mxu0 %vm489_vm0, %v488_v1  ;;  %v28_v3 = vld [vmem:[%s633_s0] sm:$0xff]  ;;  %v445_v6 = vld [vmem:[%s636_s3 + $0x8] sm:$0xff]   ;;  %v447_v8 = vld [vmem:[%s636_s3 + $0x18] sm:$0xff]  }
   0x3   :  { %393 = vmatprep.subr.bf16.mxu0 %v488_v1  ;;  %v444_v4 = vld [vmem:[%s636_s3] sm:$0xff]   ;;  %415 = vmatprep.mubr.msk.bf16.mxu1 %vm489_vm0, %v488_v1  ;;  %v29_v5 = vpack.c.bf16 %v28_v3, %v28_v3 }
   0x4   :  { %400 = vmatpush3.bf16.msra.mxu1 %v444_v4 }
   0x5   :  { %401 = vmatprep.subr.bf16.mxu1 %v488_v1 }
   0x6   :  { %394 = vmatpush3.bf16.msra.mxu0 %v443_v2 }
   0x7   :  { %419 = vmatprep.subr.bf16.mxu0 %v488_v1 }
   0x8   :  { %402 = vmatpush3.bf16.msra.mxu1 %v445_v6 }
   0x9   :  { %396 = vmatmul.mubr.msk.bf16.vlgmr.msra.gmra.mrb[0].mxu0 %vm53_vm1, %v29_v5  ;;  %403 = vmatprep.subr.bf16.mxu1 %v488_v1 }
   0xa   :  { %435 = vmatprep.mubr.msk.bf16.mxu0 %vm489_vm0, %v488_v1 }
   0xc   :  { %404 = vmatpush3.bf16.msra.mxu1 %v446_v7 }
   0xd   :  { %405 = vmatprep.subr.bf16.mxu1 %v488_v1 }
   0xe   :  { %12 = vsyncpa [#allocation3], 0  ;;  %v448_v9 = vld [vmem:[%s636_s3 + $0x20] sm:$0xff]   ;;  %v449_v10 = vld [vmem:[%s636_s3 + $0x28] sm:$0xff]  }
   0xf   :  { %v450_v11 = vld [vmem:[%s636_s3 + $0x30] sm:$0xff]   ;;  %v451_v12 = vld [vmem:[%s636_s3 + $0x38] sm:$0xff]   ;;  %v452_v13 = vld [vmem:[%s638_s5] sm:$0xff]  }
  0x10   :  { %406 = vmatpush3.bf16.msra.mxu1 %v447_v8  ;;  %420 = vmatpush3.bf16.msra.mxu0 %v452_v13  ;;  %v453_v14 = vld [vmem:[%s638_s5 + $0x8] sm:$0xff]   ;;  %v454_v15 = vld [vmem:[%s638_s5 + $0x10] sm:$0xff]   ;;  %v455_v16 = vld [vmem:[%s638_s5 + $0x18] sm:$0xff]  }
  0x11   :  { %407 = vmatprep.subr.bf16.mxu1 %v488_v1  ;;  %421 = vmatprep.subr.bf16.mxu0 %v488_v1  ;;  %v456_v17 = vld [vmem:[%s638_s5 + $0x20] sm:$0xff]   ;;  %v457_v18 = vld [vmem:[%s638_s5 + $0x28] sm:$0xff]   ;;  %v458_v27 = vld [vmem:[%s638_s5 + $0x30] sm:$0xff]  }
  0x12   :  { %v348_v19 = vld [vmem:[%s635_s2] ss:$0 sm:$0xff]  ;;  %v459_v28 = vld [vmem:[%s638_s5 + $0x38] sm:$0xff]  }
  0x13   :  { %v352_v29 = vld [vmem:[%s637_s4] ss:$0 sm:$0xff]  ;;  %s490_s4 = smov [#allocation2]  }
  0x14   :  { %408 = vmatpush3.bf16.msra.mxu1 %v448_v9  ;;  %422 = vmatpush3.bf16.msra.mxu0 %v453_v14  ;;  %v361_v37 = vld [vmem:[%s639_s6] ss:$0 sm:$0xff]  ;;  %s340_s5 = sshll.u32 %s490_s4, 4  ;;  %s341_s5 = int_to_ptr.vmem [resolvable:$true] %s340_s5 }
  0x15   :  { %409 = vmatprep.subr.bf16.mxu1 %v488_v1  ;;  %423 = vmatprep.subr.bf16.mxu0 %v488_v1  ;;  %s464_s6 = scalar_lea.vmem %s341_s5, 128  ;;  %p469_p1 = scmp.lt.s32.totalorder %s341_s5, %s341_s5 }
  0x16   :  { %p465_p0 = scmp.ne.s32.totalorder %s341_s5, %s464_s6  ;;  %p470_p2 = scmp.lt.s32.totalorder %s464_s6, %s464_s6 }
  0x18   :  { %410 = vmatpush3.bf16.msra.mxu1 %v449_v10  ;;  %424 = vmatpush3.bf16.msra.mxu0 %v454_v15  ;;  %p471_p3 = por %p470_p2, %p469_p1 }
  0x19   :  { %411 = vmatprep.subr.bf16.mxu1 %v488_v1  ;;  %425 = vmatprep.subr.bf16.mxu0 %v488_v1 }
  0x1a   :  { %p472_p4 = pnand %p471_p3, %p465_p0 }
  0x1c   :  { %412 = vmatpush3.bf16.msra.mxu1 %v450_v11  ;;  %426 = vmatpush3.bf16.msra.mxu0 %v455_v16 }
  0x1d   :  { %413 = vmatprep.subr.bf16.mxu1 %v488_v1  ;;  %427 = vmatprep.subr.bf16.mxu0 %v488_v1 }
  0x20   :  { %414 = vmatpush3.bf16.msra.mxu1 %v451_v12  ;;  %428 = vmatpush3.bf16.msra.mxu0 %v456_v17 }
  0x21   :  { %429 = vmatprep.subr.bf16.mxu0 %v488_v1 }
  0x24   :  { %430 = vmatpush3.bf16.msra.mxu0 %v457_v18 }
  0x25   :  { %431 = vmatprep.subr.bf16.mxu0 %v488_v1 }
  0x28   :  { %432 = vmatpush3.bf16.msra.mxu0 %v458_v27 }
  0x29   :  { %433 = vmatprep.subr.bf16.mxu0 %v488_v1 }
  0x2c   :  { %434 = vmatpush3.bf16.msra.mxu0 %v459_v28 }
  0xdc   :  { %v91_v20 = vpop.f32.mrb[0].mxu0 }
  0xdd   :  { %v92_v21 = vadd.f32 %v348_v19, %v91_v20  ;;  %v397_v22 = vpop.f32.mrb[1].mxu0 }
  0xde   :  { %v94_v23 = vpop.f32.mrb[2].mxu0 }
  0xdf   :  { %v97_v24 = vmax.f32 %v92_v21, 0.0  ;;  %v398_v25 = vpop.f32.mrb[3].mxu0 }
  0xe1   :  { %v98_v26 = vpack.c.bf16 %v97_v24, %v97_v24 }
  0xe3   :  { %416 = vmatmul.mubr.bf16.vlgmr.msra.gmra.mrb[0].mxu1 %v98_v26 }
 0x1b6   :  { %v204_v30 = vpop.f32.mrb[0].mxu1 }
 0x1b7   :  { %v205_v31 = vadd.f32 %v352_v29, %v204_v30  ;;  %v417_v32 = vpop.f32.mrb[1].mxu1 }
 0x1b8   :  { %v207_v33 = vpop.f32.mrb[2].mxu1 }
 0x1b9   :  { %v210_v34 = vmax.f32 %v205_v31, 0.0  ;;  %v418_v35 = vpop.f32.mrb[3].mxu1 }
 0x1bb   :  { %v211_v36 = vpack.c.bf16 %v210_v34, %v210_v34 }
 0x1bd   :  { %436 = vmatmul.mubr.bf16.vlgmr.msra.gmra.mrb[4].mxu0 %v211_v36 }
 0x290   :  { %v317_v38 = vpop.f32.mrb[4].mxu0 }
 0x291   :  { %v318_v39 = vadd.f32 %v361_v37, %v317_v38  ;;  %v437_v40 = vpop.f32.mrb[5].mxu0 }
 0x292   :  { %v320_v41 = vpop.f32.mrb[6].mxu0 }
 0x293   :  { %323 = vmax.xlane.f32.xlu0 %v318_v39  ;;  %v438_v42 = vpop.f32.mrb[7].mxu0 }
 0x320   :  { %v324_v43 = vpop.xlane.xlu0 %323 }
 0x321   :  { %v325_v44 = vsub.f32 %v318_v39, %v324_v43 }
 0x323   :  { %v326_v45 = vmul.f32 1.442695, %v325_v44 }
 0x325   :  { %460 = vpow2.f32 %v326_v45 }
 0x32f   :  { %v461_v46 = vpop.eup %460 }
 0x330   :  { %328 = vadd.xlane.f32.xlu0 %v461_v46 }
 0x3bd   :  { %v329_v47 = vpop.xlane.xlu0 %328 }
 0x3be   :  { %462 = vlog2.f32 %v329_v47 }
 0x3c8   :  { %v463_v48 = vpop.eup %462 }
 0x3c9   :  { %v331_v49 = vmul.f32 0.6931472, %v463_v48 }
 0x3cb   :  { %v332_v50 = vsub.f32 %v325_v44, %v331_v49 }
 0x3cd   :  { %333 = vst [vmem:[#allocation2] sm:$0xff] %v332_v50 }
 0x3ce   :  { %475 = shalt.err (!%p472_p4)
}
 0x3cf   :  { %s476_s18 = scalar_lea.hbm %s640_s7, 128 }
 0x3d0   :  { %p477_p5 = scmp.ne.s32.totalorder %s640_s7, %s476_s18  ;;  %p480_p6 = scmp.lt.u32.totalorder %s476_s18, %s640_s7 }
 0x3d2   :  { %p482_p7 = pnand %p480_p6, %p477_p5 }
 0x3d4   :  { %485 = shalt.err (!%p482_p7)
}
 0x3d5   :  { %343 = dma.vmem_to_hbm [thread:$0]  %s341_s5, 128, %s640_s7, [#allocation3]  }
 0x3d6   :  { %486 = dma.done.wait [#allocation3], 128  }
 0x3d7   :  { %487 = vsyncadd [#allocation3], 4294967168 }
 0x3d8   :  { %347 = vsyncpa [#allocation3], 1 }

</bundles_post_ra>
